<compile_context>
chip_gen: v7x
topology: tpu7x:2x2x1
jax: 0.10.0
libtpu: 0.0.40
codegen_flags: <defaults>
</compile_context>

<pallas_src>
import functools
import math

import jax
import jax.numpy as jnp
from jax import lax
from jax.experimental import pallas as pl
from jax.experimental.pallas import tpu as pltpu


# ----------------------------- configuration -------------------------------
B = 2                        # batch
L = 8                        # sequence length
WORD_VOCAB = 32
WORD_VEC_SIZE = 32
WORD_PAD_IDX = 0
FEAT_VOCAB = 16
FEAT_VEC_EXPONENT = 0.7
FEAT_PAD_IDX = 0
FEAT_DIM = int(FEAT_VOCAB ** FEAT_VEC_EXPONENT)      # concat merge -> vocab**0.7 = 6
EMB_SIZE = WORD_VEC_SIZE + FEAT_DIM                  # feat_merge == 'concat' -> 38
MAX_LEN = 5000
TOK_BLOCK = 512                                      # token-grid block at large B*L

# TODO(synk): only feat_merge='concat', dropout=0, step=None path is implemented
#             (matches the configuration exercised here).


# ------------------------------- kernel ------------------------------------
def _embeddings_kernel(idx_ref, tab_ref, out_ref):
    """One token-block per grid step.

    idx_ref : (TOK, 3)     int32   precomputed fused-table row ids per token
    tab_ref : (Vpad, Epad) float32 fused block-diagonal table (pre-scaled word/feat
                                   rows + per-batch PE rows), fully VMEM resident
    out_ref : (TOK, Epad)  float32 lane-dense (Epad = 128) output block
    """
    tok = idx_ref.shape[0]
    v_pad = tab_ref.shape[0]

    idx = idx_ref[...]                                            # (TOK, 3) int32
    iota_v = lax.broadcasted_iota(jnp.int32, (tok, v_pad), 1)     # lane iota only

    # fused one-hot: word row | feat row | PE row (disjoint ranges by construction)
    sel = (iota_v == idx[:, 0:1]) | (iota_v == idx[:, 1:2]) | (iota_v == idx[:, 2:3])
    onehot = sel.astype(jnp.float32)                              # (TOK, Vpad)

    # one MXU matmul does: word gather + feat gather + concat + sqrt(E) scale + PE add
    out_ref[...] = jnp.dot(onehot, tab_ref[...],
                           preferred_element_type=jnp.float32)    # (TOK, Epad)


# ------------------------------- wrappers -----------------------------------
def embeddings_forward_padded(source, fused_tab, *, tok_block=TOK_BLOCK):
    """source: (B, L, 2) int32 ; fused_tab: (Vpad, 128) f32.

    Returns the lane-dense (B, L, 128) f32 slab (columns >= EMB_SIZE are zero).
    Preferred output for downstream consumers (first encoder matmul can read it with
    zero-padded weight rows, avoiding an extra slice copy).
    """
    b, l, nfeat = source.shape
    assert nfeat == 2
    n = b * l
    v_pad, e_pad = fused_tab.shape

    # ---- index prep (wrapper-side, keeps the kernel's VPU path minimal) ----
    word_rows = jnp.clip(source[..., 0].reshape(n), 0, WORD_VOCAB - 1)
    feat_rows = jnp.clip(source[..., 1].reshape(n), 0, FEAT_VOCAB - 1) + WORD_VOCAB
    batch_ids = jnp.broadcast_to(
        jnp.arange(b, dtype=jnp.int32)[:, None], (b, l)).reshape(n)
    pe_rows = batch_ids + (WORD_VOCAB + FEAT_VOCAB)
    idx3 = jnp.stack([word_rows, feat_rows, pe_rows], axis=-1).astype(jnp.int32)

    # ---- token-axis padding / block choice ----
    if n >= tok_block:
        tok = tok_block
    else:
        tok = -(-n // 8) * 8                       # whole problem, sublane-rounded
    n_pad = -(-n // tok) * tok
    if n_pad != n:
        idx3 = jnp.pad(idx3, ((0, n_pad - n), (0, 0)))   # pad rows hit row 0 (harmless)
    grid = (n_pad // tok,)

    cost = pl.CostEstimate(
        flops=2 * n_pad * v_pad * e_pad,
        transcendentals=0,
        bytes_accessed=n_pad * 3 * 4 + v_pad * e_pad * 4 + n_pad * e_pad * 4)

    out_padded = pl.pallas_call(
        _embeddings_kernel,
        out_shape=jax.ShapeDtypeStruct((n_pad, e_pad), jnp.float32),
        grid=grid,
        in_specs=[pl.BlockSpec((tok, 3), lambda i: (i, 0)),
                  pl.BlockSpec((v_pad, e_pad), lambda i: (0, 0))],   # table stays resident
        out_specs=pl.BlockSpec((tok, e_pad), lambda i: (i, 0)),
        compiler_params=pltpu.CompilerParams(
            dimension_semantics=("parallel",)),      # shards across v7x's 2 TCs at scale
        cost_estimate=cost,
    )(idx3, fused_tab)

    if n_pad != n:
        out_padded = out_padded[:n]
    return out_padded.reshape(b, l, e_pad)           # layout-preserving reshape (no copy)


def embeddings_forward(source, fused_tab):
    """Module-semantics output: (B, L, EMB_SIZE) float32."""
    return embeddings_forward_padded(source, fused_tab)[:, :, :EMB_SIZE]


# --------------------------- parameter builders ------------------------------
def make_positional_encoding(max_len, dim):
    pos = jnp.arange(max_len, dtype=jnp.float32)[:, None]               # (max_len, 1)
    div = jnp.exp(jnp.arange(0, dim, 2, dtype=jnp.float32)
                  * -(math.log(10000.0) / dim))                         # (dim/2,)
    angles = pos * div                                                  # (max_len, dim/2)
    pe = jnp.zeros((max_len, dim), jnp.float32)
    pe = pe.at[:, 0::2].set(jnp.sin(angles))
    pe = pe.at[:, 1::2].set(jnp.cos(angles))
    return pe                                                           # (max_len, dim)


def init_params(key):
    k_w, k_f = jax.random.split(key)
    word_tab = jax.random.normal(k_w, (WORD_VOCAB, WORD_VEC_SIZE), jnp.float32)
    feat_tab = jax.random.normal(k_f, (FEAT_VOCAB, FEAT_DIM), jnp.float32)
    # nn.Embedding(padding_idx=...) initializes the padding row to zeros
    word_tab = word_tab.at[WORD_PAD_IDX].set(0.0)
    feat_tab = feat_tab.at[FEAT_PAD_IDX].set(0.0)
    return word_tab, feat_tab


def build_fused_table(word_tab, feat_tab, pe_full, batch):
    """Block-diagonal (Vw+Vf+B -> pad8, 128) table: word/feat rows pre-scaled by
    sqrt(E), plus one PE row per batch element (unscaled).  Built once at init time.
    NOTE: coupled to the batch size (PE rows are per batch element)."""
    vw, dw = word_tab.shape
    vf, df = feat_tab.shape
    e = dw + df
    scale = jnp.float32(math.sqrt(e))
    v_rows = vw + vf + batch
    v_pad = -(-v_rows // 8) * 8                                         # sublane multiple
    e_pad = max(128, -(-e // 128) * 128)                                # lane-dense output
    tab = jnp.zeros((v_pad, e_pad), jnp.float32)
    tab = tab.at[:vw, :dw].set(word_tab * scale)
    tab = tab.at[vw:vw + vf, dw:e].set(feat_tab * scale)
    tab = tab.at[vw + vf:v_rows, :e].set(pe_full[:batch])
    return tab


# ------------------------------ reference ------------------------------------
def reference_forward(source, word_tab, feat_tab, pe_full):
    emb = jnp.concatenate(
        [word_tab[source[..., 0]], feat_tab[source[..., 1]]], axis=-1)  # (B, L, E)
    emb = emb * math.sqrt(EMB_SIZE)
    # literal PyTorch semantics: pe[:emb.size(0)] with batch-first emb
    emb = emb + pe_full[:source.shape[0]][:, None, :]                   # (B,1,E) bcast over L
    return emb


# --------------------------------- main --------------------------------------
if __name__ == "__main__":
    key = jax.random.PRNGKey(0)
    k_params, k_src = jax.random.split(key)

    word_tab, feat_tab = init_params(k_params)
    pe_full = make_positional_encoding(MAX_LEN, EMB_SIZE)               # (max_len, E)
    fused_tab = build_fused_table(word_tab, feat_tab, pe_full, B)       # (56, 128)

    k_w, k_f = jax.random.split(k_src)
    word_idx = jax.random.randint(k_w, (B, L), 0, WORD_VOCAB, jnp.int32)
    feat_idx = jax.random.randint(k_f, (B, L), 0, FEAT_VOCAB, jnp.int32)
    source = jnp.stack([word_idx, feat_idx], axis=-1)                   # (B, L, 2)

    out = embeddings_forward(source, fused_tab)
    out = jax.block_until_ready(out)

    ref = reference_forward(source, word_tab, feat_tab, pe_full)
    assert out.shape == (B, L, EMB_SIZE), out.shape
    assert jnp.allclose(out, ref, atol=1e-5, rtol=1e-5), "mismatch vs reference"

    print("KERNEL_OK")
</pallas_src>

<mosaic_0001>
module attributes {stable_mosaic.version = 11 : i64} {
  func.func @_embeddings_kernel(%arg0: i32, %arg1: memref<16x3xi32, #tpu.memory_space<vmem>>, %arg2: memref<56x128xf32, #tpu.memory_space<vmem>>, %arg3: memref<16x128xf32, #tpu.memory_space<vmem>>) attributes {dimension_semantics = [#tpu.dimension_semantics<parallel>], iteration_bounds = array<i64: 1>, scalar_prefetch = 0 : i64, scratch_operands = 0 : i64, tpu.core_type = #tpu.core_type<tc>, window_params = [{transform_indices = @transform_0, window_bounds = array<i64: 16, 3>}, {pipeline_mode = #tpu.pipeline_mode<synchronous>, transform_indices = @transform_1, window_bounds = array<i64: 56, 128>}, {transform_indices = @transform_2, window_bounds = array<i64: 16, 128>}]} {
    %c0 = arith.constant 0 : index
    %c0_0 = arith.constant 0 : index
    %0 = vector.load %arg1[%c0, %c0_0] : memref<16x3xi32, #tpu.memory_space<vmem>>, vector<16x3xi32>
    %1 = tpu.iota {dimensions = array<i32: 1>} : vector<16x56xi32>
    %2 = vector.extract_strided_slice %0 {offsets = [0, 0], sizes = [16, 1], strides = [1, 1]} : vector<16x3xi32> to vector<16x1xi32>
    %3 = vector.broadcast %2 : vector<16x1xi32> to vector<16x56xi32>
    %4 = arith.cmpi eq, %1, %3 : vector<16x56xi32>
    %5 = vector.extract_strided_slice %0 {offsets = [0, 1], sizes = [16, 1], strides = [1, 1]} : vector<16x3xi32> to vector<16x1xi32>
    %6 = vector.broadcast %5 : vector<16x1xi32> to vector<16x56xi32>
    %7 = arith.cmpi eq, %1, %6 : vector<16x56xi32>
    %8 = arith.ori %4, %7 : vector<16x56xi1>
    %9 = vector.extract_strided_slice %0 {offsets = [0, 2], sizes = [16, 1], strides = [1, 1]} : vector<16x3xi32> to vector<16x1xi32>
    %10 = vector.broadcast %9 : vector<16x1xi32> to vector<16x56xi32>
    %11 = arith.cmpi eq, %1, %10 : vector<16x56xi32>
    %12 = arith.ori %8, %11 : vector<16x56xi1>
    %13 = arith.extui %12 : vector<16x56xi1> to vector<16x56xi32>
    %14 = arith.sitofp %13 : vector<16x56xi32> to vector<16x56xf32>
    %c0_1 = arith.constant 0 : index
    %c0_2 = arith.constant 0 : index
    %15 = vector.load %arg2[%c0_1, %c0_2] : memref<56x128xf32, #tpu.memory_space<vmem>>, vector<56x128xf32>
    %cst = arith.constant dense<0.000000e+00> : vector<16x128xf32>
    %16 = tpu.matmul %14, %15, %cst {dimension_numbers = #tpu.dot_dimension_numbers<[1], [0], [0], [1], [0, 0, 1, 1], [], []>} : vector<16x56xf32>, vector<56x128xf32>, vector<16x128xf32> -> vector<16x128xf32>
    %c0_3 = arith.constant 0 : index
    %c0_4 = arith.constant 0 : index
    %17 = vector.load %arg3[%c0_3, %c0_4] : memref<16x128xf32, #tpu.memory_space<vmem>>, vector<16x128xf32>
    tpu.vector_store %arg3[%c0_3, %c0_4], %16 {strides = array<i32>} : memref<16x128xf32, #tpu.memory_space<vmem>>, vector<16x128xf32>,
    return
  }
  func.func @transform_0(%arg0: i32) -> (i32, i32) {
    %c0_i32 = arith.constant 0 : i32
    %c0_i32_0 = arith.constant 0 : i32
    return %arg0, %c0_i32 : i32, i32
  }
  func.func @transform_1(%arg0: i32) -> (i32, i32) {
    %c0_i32 = arith.constant 0 : i32
    %c0_i32_0 = arith.constant 0 : i32
    %c0_i32_1 = arith.constant 0 : i32
    return %c0_i32, %c0_i32_0 : i32, i32
  }
  func.func @transform_2(%arg0: i32) -> (i32, i32) {
    %c0_i32 = arith.constant 0 : i32
    %c0_i32_0 = arith.constant 0 : i32
    return %arg0, %c0_i32 : i32, i32
  }
}

</mosaic_0001>

<bundles_post_ra>
// kernel: tpu_custom_call.1
= control target key start
LH: loop header
LB: loop body
LE: loop exit
PB: predicated region body
PF: predicated region fallthrough
CT: control target
= control target key end

     0   :  { %7 = vsyncpa [#allocation3], 0  ;;  %s333_s0 = inlined_call_operand.vmem [shape: s32[16,3], index: 0, kind: input, shape index: {}]   ;;  %s334_s1 = inlined_call_operand.hbm [shape: f32[56,128], index: 1, kind: input, shape index: {}]   ;;  %s335_s2 = inlined_call_operand.hbm [shape: f32[16,128], index: 2, kind: output, shape index: {}]  }
   0x1   :  { %8 = vsyncpa [#allocation4], 0  ;;  %s274_s9 = smov [#allocation2]   ;;  %s226_s13 = scalar_lea.hbm %s334_s1, 896 }
   0x2   :  { %s16_s10 = sshll.u32 %s274_s9, 4  ;;  %p227_p0 = scmp.ne.s32.totalorder %s334_s1, %s226_s13  ;;  %s17_s10 = int_to_ptr.vmem [resolvable:$true] %s16_s10 }
   0x3   :  { %p230_p1 = scmp.lt.u32.totalorder %s226_s13, %s334_s1 }
   0x5   :  { %p232_p2 = pnand %p230_p1, %p227_p0 }
   0x7   :  { %235 = shalt.err (!%p232_p2)
}
   0x8   :  { %s236_s18 = scalar_lea.vmem %s17_s10, 896  ;;  %p241_p4 = scmp.lt.s32.totalorder %s17_s10, %s17_s10 }
   0x9   :  { %p237_p3 = scmp.ne.s32.totalorder %s17_s10, %s236_s18  ;;  %p242_p5 = scmp.lt.s32.totalorder %s236_s18, %s236_s18 }
   0xb   :  { %p243_p6 = por %p242_p5, %p241_p4 }
   0xd   :  { %p244_p7 = pnand %p243_p6, %p237_p3 }
   0xf   :  { %247 = shalt.err (!%p244_p7)
}
  0x10   :  { %s275_s19 = smov 128   ;;  %s276_s20 = smov 8  }
  0x11   :  { %22 = dma.hbm_to_vmem [thread:$0]  %s334_s1, 896, %s17_s10, [#allocation3], %s275_s19, %s275_s19, %s276_s20  }
  0x12   :  { %270 = dma.done.wait [#allocation3], 896  }
  0x13   :  { %271 = vsyncadd [#allocation3], 4294966400  ;;  %v277_v0 = vmov 0   ;;  %v27_v1 = vld [vmem:[%s333_s0 + $0x8] sm:$0xff]  ;;  %v26_v2 = vld [vmem:[%s333_s0] sm:$0xff]  ;;  %v278_v9 = vmov 1   ;;  %v28_v17 = vlaneseq }
  0x14   :  { %222 = vset.pattern.permute.xlu1 %v277_v0  ;;  %220 = vset.pattern.permute.xlu0 %v277_v0  ;;  %v62_v3 = vld [vmem:[#allocation2] sm:$0xff]  ;;  %v63_v4 = vld [vmem:[#allocation2 + $0x8] sm:$0xff]  ;;  %v64_v5 = vld [vmem:[#allocation2 + $0x10] sm:$0xff]  ;;  %v279_v13 = vmov 2   ;;  %vm69_vm9 = vcmask 457728   ;;  %v280_v23 = vmov 0.0  }
  0x15   :  { %34 = vperm.xlu1 %222, %v27_v1   ;;  %31 = vperm.xlu0 %220, %v26_v2   ;;  %v65_v6 = vld [vmem:[#allocation2 + $0x18] sm:$0xff]  ;;  %v200_v7 = vpack.c.bf16 %v63_v4, %v62_v3  ;;  %v66_v10 = vld [vmem:[#allocation2 + $0x20] sm:$0xff]  ;;  %v67_v11 = vld [vmem:[#allocation2 + $0x28] sm:$0xff]  ;;  %v29_v18 = vand.u32 127, %v28_v17  ;;  %s281_s0 = smov [#allocation5]  }
  0x16   :  { %v204_v8 = vpack.c.bf16 %v65_v6, %v64_v5  ;;  %v208_v12 = vpack.c.bf16 %v67_v11, %v66_v10  ;;  %v68_v14 = vld [vmem:[#allocation2 + $0x30] sm:$0xff]  ;;  %s158_s1 = sshll.u32 %s281_s0, 4  ;;  %s159_s1 = int_to_ptr.vmem [resolvable:$true] %s158_s1 }
  0x17   :  { %201 = vmatprep.subr.bf16.mxu0 %v200_v7  ;;  %s248_s27 = scalar_lea.vmem %s159_s1, 256  ;;  %p253_p9 = scmp.lt.s32.totalorder %s159_s1, %s159_s1 }
  0x18   :  { %203 = vmatpush3.bf16.msra.mxu0 %v200_v7  ;;  %p249_p8 = scmp.ne.s32.totalorder %s159_s1, %s248_s27  ;;  %p254_p10 = scmp.lt.s32.totalorder %s248_s27, %s248_s27 }
  0x19   :  { %223 = vset.pattern.permute.xlu1 %v278_v9  ;;  %221 = vset.pattern.permute.xlu0 %v278_v9 }
  0x1a   :  { %42 = vperm.xlu1 %223, %v27_v1   ;;  %39 = vperm.xlu0 %221, %v26_v2   ;;  %p255_p11 = por %p254_p10, %p253_p9 }
  0x1b   :  { %205 = vmatprep.subr.bf16.mxu0 %v204_v8 }
  0x1c   :  { %207 = vmatpush3.bf16.msra.mxu0 %v204_v8  ;;  %p256_p12 = pnand %p255_p11, %p249_p8 }
  0x1d   :  { %209 = vmatprep.subr.bf16.mxu0 %v208_v12 }
  0x1e   :  { %224 = vset.pattern.permute.xlu1 %v279_v13  ;;  %225 = vset.pattern.permute.xlu0 %v279_v13 }
  0x1f   :  { %49 = vperm.xlu1 %224, %v26_v2   ;;  %52 = vperm.xlu0 %225, %v27_v1  }
  0x20   :  { %211 = vmatpush3.bf16.msra.mxu0 %v208_v12 }
  0x21   :  { %195 = vmatprep.subr.mxu0 %v68_v14 }
  0x24   :  { %196 = vmatpush3.msra.mxu0 %v68_v14 }
  0x94   :  { %v35_v15 = vpop.permute.xlu1 %34  ;;  %v32_v16 = vpop.permute.xlu0 %31 }
  0x95   :  { %vm37_vm2 = vcmp.eq.s32.totalorder %v29_v18, %v35_v15  ;;  %vm36_vm3 = vcmp.eq.s32.totalorder %v29_v18, %v32_v16 }
  0x99   :  { %v43_v19 = vpop.permute.xlu1 %42  ;;  %v40_v20 = vpop.permute.xlu0 %39 }
  0x9a   :  { %vm45_vm0 = vcmp.eq.s32.totalorder %v29_v18, %v43_v19  ;;  %vm44_vm1 = vcmp.eq.s32.totalorder %v29_v18, %v40_v20 }
  0x9b   :  { %vm47_vm4 = vmor %vm37_vm2, %vm45_vm0 }
  0x9c   :  { %vm46_vm5 = vmor %vm36_vm3, %vm44_vm1 }
  0x9e   :  { %v50_v21 = vpop.permute.xlu1 %49  ;;  %v53_v22 = vpop.permute.xlu0 %52 }
  0x9f   :  { %vm54_vm6 = vcmp.eq.s32.totalorder %v29_v18, %v50_v21  ;;  %vm55_vm7 = vcmp.eq.s32.totalorder %v29_v18, %v53_v22 }
  0xa0   :  { %vm57_vm8 = vmor %vm47_vm4, %vm55_vm7 }
  0xa1   :  { %vm56_vm10 = vmor %vm46_vm5, %vm54_vm6  ;;  %v171_v24 = vsel %vm57_vm8, 1.0, %v280_v23 }
  0xa2   :  { %v170_v25 = vsel %vm56_vm10, 1.0, %v280_v23 }
  0xa3   :  { %197 = vmatprep.mubr.msk.f32.mxu0 %vm69_vm9, %v170_v25 }
  0xa4   :  { %198 = vmatmul.mubr.msk.f32.vlgmr.msra.gmra.mrb[0].mxu0 %vm69_vm9, %v171_v24 }
 0x177   :  { %v199_v26 = vpop.f32.mrb[0].mxu0 }
 0x178   :  { %152 = vst [vmem:[#allocation5 + $0x8] sm:$0xff] %v199_v26  ;;  %v142_v27 = vpop.f32.mrb[1].mxu0 }
 0x179   :  { %151 = vst [vmem:[#allocation5] sm:$0xff] %v142_v27 }
 0x17a   :  { %259 = shalt.err (!%p256_p12)
}
 0x17b   :  { %s260_s30 = scalar_lea.hbm %s335_s2, 256 }
 0x17c   :  { %p261_p13 = scmp.ne.s32.totalorder %s335_s2, %s260_s30  ;;  %p264_p0 = scmp.lt.u32.totalorder %s260_s30, %s335_s2 }
 0x17e   :  { %p266_p1 = pnand %p264_p0, %p261_p13 }
 0x180   :  { %269 = shalt.err (!%p266_p1)
}
 0x181   :  { %164 = dma.vmem_to_hbm [thread:$0]  %s159_s1, 256, %s335_s2, [#allocation4], %s275_s19, %s275_s19, %s276_s20  }
 0x182   :  { %272 = dma.done.wait [#allocation4], 256  }
 0x183   :  { %273 = vsyncadd [#allocation4], 4294967040 }
 0x184   :  { %168 = vsyncpa [#allocation3], 1 }
 0x185   :  { %169 = vsyncpa [#allocation4], 1 }

</bundles_post_ra>
